<compile_context>
chip_gen: v6e
topology: v6e:2x2x1
jax: 0.10.0
libtpu: 0.0.40
codegen_flags: <defaults>
</compile_context>

<pallas_src>
import jax
import jax.numpy as jnp
from jax import lax
from jax.experimental import pallas as pl
from jax.experimental.pallas import tpu as pltpu


def residual_block_kernel(x_ref, t1_ref, b1_ref, t2_ref, b2_ref, o_ref,
                          pad_ref):
    # x_ref  : (gb, H, L)    lane-dense input block  (L = G*W*C >= 128)
    # t*_ref : (3, L, L)     banded block-Toeplitz conv weights (one per dy)
    # b*_ref : (1, L)        lane-replicated bias
    # o_ref  : (gb, H, L)    lane-dense output block
    # pad_ref: (gb, H+2, L)  f32 scratch; rows 0 and H+1 are the zero H-pad
    gb, Hp, L = pad_ref.shape
    H = Hp - 2
    M = gb * H

    x = x_ref[...].astype(jnp.float32)

    # Zero only the two H-padding rows (W padding is baked into the Toeplitz
    # weights, so there is no lane-direction ring at all).
    zrow = jnp.zeros((gb, 1, L), jnp.float32)
    pad_ref[:, 0:1, :] = zrow
    pad_ref[:, Hp - 1:Hp, :] = zrow

    def conv3x3(t_ref, b_ref):
        acc = jnp.broadcast_to(b_ref[...], (M, L))
        for dy in range(3):                         # static, unrolled
            rows = pad_ref[:, dy:dy + H, :].reshape(M, L)
            acc = acc + jnp.dot(rows, t_ref[dy],
                                preferred_element_type=jnp.float32)
        return acc

    # conv1 + ReLU: interior <- x, contract against T1.
    pad_ref[:, 1:H + 1, :] = x
    y1 = jnp.maximum(conv3x3(t1_ref, b1_ref), 0.0)

    # conv2 + skip: interior <- y1, contract against T2, add residual, store.
    pad_ref[:, 1:H + 1, :] = y1.reshape(gb, H, L)
    y2 = conv3x3(t2_ref, b2_ref).reshape(gb, H, L)
    o_ref[...] = (x + y2).astype(o_ref.dtype)


def _toeplitz_conv_weight(w_hwio, width, group):
    """(3,3,C,C) HWIO conv weight -> (3, G*W*C, G*W*C) banded block-Toeplitz
    matrices (one per dy).  They encode the dx taps, the channel mixing and
    zero padding along W, and are block-diagonal across the G packed images."""
    kh, kw, cin, cout = w_hwio.shape
    assert (kh, kw) == (3, 3) and cin == cout
    C, W, G = cin, width, group
    p = jnp.arange(W)
    dx = p[:, None] - p[None, :] + 1                    # desired kw tap index
    valid = (dx >= 0) & (dx <= 2)
    taps = w_hwio[:, jnp.clip(dx, 0, 2)]                # (3, W, W, C, C)
    taps = jnp.where(valid[None, :, :, None, None], taps, 0.0)
    t = taps.transpose(0, 1, 3, 2, 4).reshape(3, W * C, W * C)
    if G == 1:
        return t
    eye = jnp.eye(G, dtype=t.dtype)
    return jnp.einsum('gh,dkn->dgkhn', eye, t).reshape(3, G * W * C, G * W * C)


def residual_block(x_nchw, w1, b1, w2, b2, *, groups_per_block=1):
    """x_nchw: (B, C, H, W) f32.  w*: (3, 3, C_in, C_out) HWIO.  b*: (C,)."""
    B, C, H, W = x_nchw.shape

    # Pack G images side-by-side on the lane axis so each stored row is
    # L = G*W*C >= 128 lanes (full-width vld/vst, unmasked MXU result lanes).
    G = B
    for d in range(1, B + 1):
        if B % d == 0 and d * W * C >= 128:
            G = d
            break
    L = G * W * C
    num_groups = B // G
    assert num_groups % groups_per_block == 0
    gb = groups_per_block
    grid = (num_groups // gb,)
    # Note: with B=2, W*C=64 -> G=2, L=128, grid=(1,): whole batch in one step
    # (the single-TC recommendation); >=2 steps/core on v7x needs larger B.

    # NCHW -> NHWC -> (groups, H, L) with lane index = (g, w, c).
    x_nhwc = jnp.transpose(x_nchw, (0, 2, 3, 1))
    x_pack = x_nhwc.reshape(num_groups, G, H, W * C)
    x_pack = jnp.transpose(x_pack, (0, 2, 1, 3)).reshape(num_groups, H, L)

    t1 = _toeplitz_conv_weight(w1.astype(jnp.float32), W, G)
    t2 = _toeplitz_conv_weight(w2.astype(jnp.float32), W, G)
    b1r = jnp.tile(b1.astype(jnp.float32), G * W).reshape(1, L)
    b2r = jnp.tile(b2.astype(jnp.float32), G * W).reshape(1, L)

    flops = 2 * 2 * B * H * W * 9 * C * C               # the two real convs
    bytes_accessed = 4 * (2 * x_pack.size + t1.size + t2.size
                          + b1r.size + b2r.size)
    cost = pl.CostEstimate(flops=flops, transcendentals=0,
                           bytes_accessed=int(bytes_accessed))

    out = pl.pallas_call(
        residual_block_kernel,
        out_shape=jax.ShapeDtypeStruct((num_groups, H, L), x_nchw.dtype),
        grid=grid,
        in_specs=[
            pl.BlockSpec((gb, H, L), lambda i: (i, 0, 0)),
            pl.BlockSpec((3, L, L), lambda i: (0, 0, 0)),    # resident weights
            pl.BlockSpec((1, L), lambda i: (0, 0)),
            pl.BlockSpec((3, L, L), lambda i: (0, 0, 0)),
            pl.BlockSpec((1, L), lambda i: (0, 0)),
        ],
        out_specs=pl.BlockSpec((gb, H, L), lambda i: (i, 0, 0)),
        scratch_shapes=[pltpu.VMEM((gb, H + 2, L), jnp.float32)],
        compiler_params=pltpu.CompilerParams(
            dimension_semantics=("parallel",)),
        cost_estimate=cost,
    )(x_pack, t1, b1r, t2, b2r)

    # (groups, H, L) -> (B, H, W, C) -> NCHW.
    out = out.reshape(num_groups, H, G, W * C)
    out = jnp.transpose(out, (0, 2, 1, 3)).reshape(B, H, W, C)
    return jnp.transpose(out, (0, 3, 1, 2))


def _reference(x_nchw, w1, b1, w2, b2):
    """Pure-JAX reference matching PyTorch ResidualBlock semantics."""
    x = jnp.transpose(x_nchw, (0, 2, 3, 1))
    dn = ('NHWC', 'HWIO', 'NHWC')
    y1 = lax.conv_general_dilated(x, w1, (1, 1), 'SAME',
                                  dimension_numbers=dn) + b1
    y1 = jnp.maximum(y1, 0.0)
    y2 = lax.conv_general_dilated(y1, w2, (1, 1), 'SAME',
                                  dimension_numbers=dn) + b2
    return jnp.transpose(x + y2, (0, 3, 1, 2))


if __name__ == "__main__":
    key = jax.random.PRNGKey(0)
    kx, k1, k2, k3, k4 = jax.random.split(key, 5)

    B, C, H, W = 2, 4, 16, 16
    x = jax.random.normal(kx, (B, C, H, W), dtype=jnp.float32)

    # Deterministic synthetic Conv2d(channels, channels, 3, padding=1) params.
    w1 = 0.1 * jax.random.normal(k1, (3, 3, C, C), dtype=jnp.float32)
    b1 = 0.1 * jax.random.normal(k2, (C,), dtype=jnp.float32)
    w2 = 0.1 * jax.random.normal(k3, (3, 3, C, C), dtype=jnp.float32)
    b2 = 0.1 * jax.random.normal(k4, (C,), dtype=jnp.float32)

    out = jax.block_until_ready(residual_block(x, w1, b1, w2, b2))

    ref = _reference(x, w1, b1, w2, b2)
    assert out.shape == (B, C, H, W)
    err = float(jnp.max(jnp.abs(out - ref)))
    assert jnp.allclose(out, ref, atol=1e-4, rtol=1e-4), err

    print("KERNEL_OK")
</pallas_src>

<mosaic_0001>
module attributes {stable_mosaic.version = 11 : i64} {
  func.func @residual_block_kernel(%arg0: i32, %arg1: memref<1x16x128xf32, #tpu.memory_space<vmem>>, %arg2: memref<3x128x128xf32, #tpu.memory_space<vmem>>, %arg3: memref<1x128xf32, #tpu.memory_space<vmem>>, %arg4: memref<3x128x128xf32, #tpu.memory_space<vmem>>, %arg5: memref<1x128xf32, #tpu.memory_space<vmem>>, %arg6: memref<1x16x128xf32, #tpu.memory_space<vmem>>, %arg7: memref<1x18x128xf32, #tpu.memory_space<vmem>>) attributes {dimension_semantics = [#tpu.dimension_semantics<parallel>], iteration_bounds = array<i64: 1>, scalar_prefetch = 0 : i64, scratch_operands = 1 : i64, tpu.core_type = #tpu.core_type<tc>, window_params = [{transform_indices = @transform_0, window_bounds = array<i64: 1, 16, 128>}, {pipeline_mode = #tpu.pipeline_mode<synchronous>, transform_indices = @transform_1, window_bounds = array<i64: 3, 128, 128>}, {pipeline_mode = #tpu.pipeline_mode<synchronous>, transform_indices = @transform_2, window_bounds = array<i64: 1, 128>}, {pipeline_mode = #tpu.pipeline_mode<synchronous>, transform_indices = @transform_3, window_bounds = array<i64: 3, 128, 128>}, {pipeline_mode = #tpu.pipeline_mode<synchronous>, transform_indices = @transform_4, window_bounds = array<i64: 1, 128>}, {transform_indices = @transform_5, window_bounds = array<i64: 1, 16, 128>}]} {
    %c0 = arith.constant 0 : index
    %c0_0 = arith.constant 0 : index
    %c0_1 = arith.constant 0 : index
    %0 = vector.load %arg1[%c0, %c0_0, %c0_1] : memref<1x16x128xf32, #tpu.memory_space<vmem>>, vector<1x16x128xf32>
    %cst = arith.constant 0.000000e+00 : f32
    %1 = vector.broadcast %cst : f32 to vector<1x1x128xf32>
    %c0_2 = arith.constant 0 : index
    %c0_3 = arith.constant 0 : index
    %c0_4 = arith.constant 0 : index
    %2 = vector.load %arg7[%c0_2, %c0_3, %c0_4] : memref<1x18x128xf32, #tpu.memory_space<vmem>>, vector<1x1x128xf32>
    tpu.vector_store %arg7[%c0_2, %c0_3, %c0_4], %1 {strides = array<i32>} : memref<1x18x128xf32, #tpu.memory_space<vmem>>, vector<1x1x128xf32>,
    %c0_5 = arith.constant 0 : index
    %c17 = arith.constant 17 : index
    %c0_6 = arith.constant 0 : index
    %3 = vector.load %arg7[%c0_5, %c17, %c0_6] : memref<1x18x128xf32, #tpu.memory_space<vmem>>, vector<1x1x128xf32>
    tpu.vector_store %arg7[%c0_5, %c17, %c0_6], %1 {strides = array<i32>} : memref<1x18x128xf32, #tpu.memory_space<vmem>>, vector<1x1x128xf32>,
    %c0_7 = arith.constant 0 : index
    %c1 = arith.constant 1 : index
    %c0_8 = arith.constant 0 : index
    %4 = vector.load %arg7[%c0_7, %c1, %c0_8] : memref<1x18x128xf32, #tpu.memory_space<vmem>>, vector<1x16x128xf32>
    tpu.vector_store %arg7[%c0_7, %c1, %c0_8], %0 {strides = array<i32>} : memref<1x18x128xf32, #tpu.memory_space<vmem>>, vector<1x16x128xf32>,
    %c0_9 = arith.constant 0 : index
    %c0_10 = arith.constant 0 : index
    %5 = vector.load %arg3[%c0_9, %c0_10] : memref<1x128xf32, #tpu.memory_space<vmem>>, vector<1x128xf32>
    %6 = vector.shape_cast %5 : vector<1x128xf32> to vector<1x128xf32>
    %7 = vector.broadcast %6 : vector<1x128xf32> to vector<16x128xf32>
    %c0_11 = arith.constant 0 : index
    %c0_12 = arith.constant 0 : index
    %c0_13 = arith.constant 0 : index
    %8 = vector.load %arg7[%c0_11, %c0_12, %c0_13] : memref<1x18x128xf32, #tpu.memory_space<vmem>>, vector<1x16x128xf32>
    %9 = vector.shape_cast %8 : vector<1x16x128xf32> to vector<16x128xf32>
    %c0_14 = arith.constant 0 : index
    %c0_15 = arith.constant 0 : index
    %c0_16 = arith.constant 0 : index
    %10 = vector.load %arg2[%c0_14, %c0_15, %c0_16] : memref<3x128x128xf32, #tpu.memory_space<vmem>>, vector<1x128x128xf32>
    %11 = vector.shape_cast %10 : vector<1x128x128xf32> to vector<128x128xf32>
    %cst_17 = arith.constant dense<0.000000e+00> : vector<16x128xf32>
    %12 = tpu.matmul %9, %11, %cst_17 {dimension_numbers = #tpu.dot_dimension_numbers<[1], [0], [0], [1], [0, 0, 1, 1], [], []>} : vector<16x128xf32>, vector<128x128xf32>, vector<16x128xf32> -> vector<16x128xf32>
    %13 = arith.addf %7, %12 : vector<16x128xf32>
    %c0_18 = arith.constant 0 : index
    %c1_19 = arith.constant 1 : index
    %c0_20 = arith.constant 0 : index
    %14 = vector.load %arg7[%c0_18, %c1_19, %c0_20] : memref<1x18x128xf32, #tpu.memory_space<vmem>>, vector<1x16x128xf32>
    %15 = vector.shape_cast %14 : vector<1x16x128xf32> to vector<16x128xf32>
    %c1_21 = arith.constant 1 : index
    %c0_22 = arith.constant 0 : index
    %c0_23 = arith.constant 0 : index
    %16 = vector.load %arg2[%c1_21, %c0_22, %c0_23] : memref<3x128x128xf32, #tpu.memory_space<vmem>>, vector<1x128x128xf32>
    %17 = vector.shape_cast %16 : vector<1x128x128xf32> to vector<128x128xf32>
    %cst_24 = arith.constant dense<0.000000e+00> : vector<16x128xf32>
    %18 = tpu.matmul %15, %17, %cst_24 {dimension_numbers = #tpu.dot_dimension_numbers<[1], [0], [0], [1], [0, 0, 1, 1], [], []>} : vector<16x128xf32>, vector<128x128xf32>, vector<16x128xf32> -> vector<16x128xf32>
    %19 = arith.addf %13, %18 : vector<16x128xf32>
    %c0_25 = arith.constant 0 : index
    %c2 = arith.constant 2 : index
    %c0_26 = arith.constant 0 : index
    %20 = vector.load %arg7[%c0_25, %c2, %c0_26] : memref<1x18x128xf32, #tpu.memory_space<vmem>>, vector<1x16x128xf32>
    %21 = vector.shape_cast %20 : vector<1x16x128xf32> to vector<16x128xf32>
    %c2_27 = arith.constant 2 : index
    %c0_28 = arith.constant 0 : index
    %c0_29 = arith.constant 0 : index
    %22 = vector.load %arg2[%c2_27, %c0_28, %c0_29] : memref<3x128x128xf32, #tpu.memory_space<vmem>>, vector<1x128x128xf32>
    %23 = vector.shape_cast %22 : vector<1x128x128xf32> to vector<128x128xf32>
    %cst_30 = arith.constant dense<0.000000e+00> : vector<16x128xf32>
    %24 = tpu.matmul %21, %23, %cst_30 {dimension_numbers = #tpu.dot_dimension_numbers<[1], [0], [0], [1], [0, 0, 1, 1], [], []>} : vector<16x128xf32>, vector<128x128xf32>, vector<16x128xf32> -> vector<16x128xf32>
    %25 = arith.addf %19, %24 : vector<16x128xf32>
    %cst_31 = arith.constant 0.000000e+00 : f32
    %26 = vector.broadcast %cst_31 : f32 to vector<16x128xf32>
    %27 = arith.maximumf %25, %26 : vector<16x128xf32>
    %28 = vector.shape_cast %27 : vector<16x128xf32> to vector<1x16x128xf32>
    %c0_32 = arith.constant 0 : index
    %c1_33 = arith.constant 1 : index
    %c0_34 = arith.constant 0 : index
    %29 = vector.load %arg7[%c0_32, %c1_33, %c0_34] : memref<1x18x128xf32, #tpu.memory_space<vmem>>, vector<1x16x128xf32>
    tpu.vector_store %arg7[%c0_32, %c1_33, %c0_34], %28 {strides = array<i32>} : memref<1x18x128xf32, #tpu.memory_space<vmem>>, vector<1x16x128xf32>,
    %c0_35 = arith.constant 0 : index
    %c0_36 = arith.constant 0 : index
    %30 = vector.load %arg5[%c0_35, %c0_36] : memref<1x128xf32, #tpu.memory_space<vmem>>, vector<1x128xf32>
    %31 = vector.shape_cast %30 : vector<1x128xf32> to vector<1x128xf32>
    %32 = vector.broadcast %31 : vector<1x128xf32> to vector<16x128xf32>
    %c0_37 = arith.constant 0 : index
    %c0_38 = arith.constant 0 : index
    %c0_39 = arith.constant 0 : index
    %33 = vector.load %arg7[%c0_37, %c0_38, %c0_39] : memref<1x18x128xf32, #tpu.memory_space<vmem>>, vector<1x16x128xf32>
    %34 = vector.shape_cast %33 : vector<1x16x128xf32> to vector<16x128xf32>
    %c0_40 = arith.constant 0 : index
    %c0_41 = arith.constant 0 : index
    %c0_42 = arith.constant 0 : index
    %35 = vector.load %arg4[%c0_40, %c0_41, %c0_42] : memref<3x128x128xf32, #tpu.memory_space<vmem>>, vector<1x128x128xf32>
    %36 = vector.shape_cast %35 : vector<1x128x128xf32> to vector<128x128xf32>
    %cst_43 = arith.constant dense<0.000000e+00> : vector<16x128xf32>
    %37 = tpu.matmul %34, %36, %cst_43 {dimension_numbers = #tpu.dot_dimension_numbers<[1], [0], [0], [1], [0, 0, 1, 1], [], []>} : vector<16x128xf32>, vector<128x128xf32>, vector<16x128xf32> -> vector<16x128xf32>
    %38 = arith.addf %32, %37 : vector<16x128xf32>
    %c0_44 = arith.constant 0 : index
    %c1_45 = arith.constant 1 : index
    %c0_46 = arith.constant 0 : index
    %39 = vector.load %arg7[%c0_44, %c1_45, %c0_46] : memref<1x18x128xf32, #tpu.memory_space<vmem>>, vector<1x16x128xf32>
    %40 = vector.shape_cast %39 : vector<1x16x128xf32> to vector<16x128xf32>
    %c1_47 = arith.constant 1 : index
    %c0_48 = arith.constant 0 : index
    %c0_49 = arith.constant 0 : index
    %41 = vector.load %arg4[%c1_47, %c0_48, %c0_49] : memref<3x128x128xf32, #tpu.memory_space<vmem>>, vector<1x128x128xf32>
    %42 = vector.shape_cast %41 : vector<1x128x128xf32> to vector<128x128xf32>
    %cst_50 = arith.constant dense<0.000000e+00> : vector<16x128xf32>
    %43 = tpu.matmul %40, %42, %cst_50 {dimension_numbers = #tpu.dot_dimension_numbers<[1], [0], [0], [1], [0, 0, 1, 1], [], []>} : vector<16x128xf32>, vector<128x128xf32>, vector<16x128xf32> -> vector<16x128xf32>
    %44 = arith.addf %38, %43 : vector<16x128xf32>
    %c0_51 = arith.constant 0 : index
    %c2_52 = arith.constant 2 : index
    %c0_53 = arith.constant 0 : index
    %45 = vector.load %arg7[%c0_51, %c2_52, %c0_53] : memref<1x18x128xf32, #tpu.memory_space<vmem>>, vector<1x16x128xf32>
    %46 = vector.shape_cast %45 : vector<1x16x128xf32> to vector<16x128xf32>
    %c2_54 = arith.constant 2 : index
    %c0_55 = arith.constant 0 : index
    %c0_56 = arith.constant 0 : index
    %47 = vector.load %arg4[%c2_54, %c0_55, %c0_56] : memref<3x128x128xf32, #tpu.memory_space<vmem>>, vector<1x128x128xf32>
    %48 = vector.shape_cast %47 : vector<1x128x128xf32> to vector<128x128xf32>
    %cst_57 = arith.constant dense<0.000000e+00> : vector<16x128xf32>
    %49 = tpu.matmul %46, %48, %cst_57 {dimension_numbers = #tpu.dot_dimension_numbers<[1], [0], [0], [1], [0, 0, 1, 1], [], []>} : vector<16x128xf32>, vector<128x128xf32>, vector<16x128xf32> -> vector<16x128xf32>
    %50 = arith.addf %44, %49 : vector<16x128xf32>
    %51 = vector.shape_cast %50 : vector<16x128xf32> to vector<1x16x128xf32>
    %52 = arith.addf %0, %51 : vector<1x16x128xf32>
    %c0_58 = arith.constant 0 : index
    %c0_59 = arith.constant 0 : index
    %c0_60 = arith.constant 0 : index
    %53 = vector.load %arg6[%c0_58, %c0_59, %c0_60] : memref<1x16x128xf32, #tpu.memory_space<vmem>>, vector<1x16x128xf32>
    tpu.vector_store %arg6[%c0_58, %c0_59, %c0_60], %52 {strides = array<i32>} : memref<1x16x128xf32, #tpu.memory_space<vmem>>, vector<1x16x128xf32>,
    return
  }
  func.func @transform_0(%arg0: i32) -> (i32, i32, i32) {
    %c0_i32 = arith.constant 0 : i32
    %c0_i32_0 = arith.constant 0 : i32
    %c0_i32_1 = arith.constant 0 : i32
    return %arg0, %c0_i32, %c0_i32_0 : i32, i32, i32
  }
  func.func @transform_1(%arg0: i32) -> (i32, i32, i32) {
    %c0_i32 = arith.constant 0 : i32
    %c0_i32_0 = arith.constant 0 : i32
    %c0_i32_1 = arith.constant 0 : i32
    %c0_i32_2 = arith.constant 0 : i32
    return %c0_i32, %c0_i32_0, %c0_i32_1 : i32, i32, i32
  }
  func.func @transform_2(%arg0: i32) -> (i32, i32) {
    %c0_i32 = arith.constant 0 : i32
    %c0_i32_0 = arith.constant 0 : i32
    %c0_i32_1 = arith.constant 0 : i32
    return %c0_i32, %c0_i32_0 : i32, i32
  }
  func.func @transform_3(%arg0: i32) -> (i32, i32, i32) {
    %c0_i32 = arith.constant 0 : i32
    %c0_i32_0 = arith.constant 0 : i32
    %c0_i32_1 = arith.constant 0 : i32
    %c0_i32_2 = arith.constant 0 : i32
    return %c0_i32, %c0_i32_0, %c0_i32_1 : i32, i32, i32
  }
  func.func @transform_4(%arg0: i32) -> (i32, i32) {
    %c0_i32 = arith.constant 0 : i32
    %c0_i32_0 = arith.constant 0 : i32
    %c0_i32_1 = arith.constant 0 : i32
    return %c0_i32, %c0_i32_0 : i32, i32
  }
  func.func @transform_5(%arg0: i32) -> (i32, i32, i32) {
    %c0_i32 = arith.constant 0 : i32
    %c0_i32_0 = arith.constant 0 : i32
    %c0_i32_1 = arith.constant 0 : i32
    return %arg0, %c0_i32, %c0_i32_0 : i32, i32, i32
  }
}

</mosaic_0001>

<bundles_post_ra>
// kernel: tpu_custom_call.1
= control target key start
LH: loop header
LB: loop body
LE: loop exit
PB: predicated region body
PF: predicated region fallthrough
CT: control target
= control target key end

     0   :  { %10 = vsyncpa [#allocation4], 0  ;;  %s1172_s0 = inlined_call_operand.hbm [shape: f32[1,16,128], index: 0, kind: input, shape index: {}]   ;;  %s1173_s1 = inlined_call_operand.hbm [shape: f32[3,128,128], index: 1, kind: input, shape index: {}]   ;;  %s1174_s2 = inlined_call_operand.vmem [shape: f32[1,128], index: 2, kind: input, shape index: {}]   ;;  %s1175_s3 = inlined_call_operand.hbm [shape: f32[3,128,128], index: 3, kind: input, shape index: {}]   ;;  %s1176_s4 = inlined_call_operand.vmem [shape: f32[1,128], index: 4, kind: input, shape index: {}]   ;;  %s1177_s5 = inlined_call_operand.hbm [shape: f32[1,16,128], index: 5, kind: output, shape index: {}]  }
   0x1   :  { %11 = vsyncpa [#allocation7], 0 }
   0x2   :  { %12 = vsyncpa [#allocation5], 0  ;;  %s1095_s18 = smov [#allocation6]   ;;  %s1096_s20 = smov [#allocation3]  }
   0x3   :  { %s30_s19 = sshll.u32 %s1095_s18, 4  ;;  %s18_s21 = sshll.u32 %s1096_s20, 4  ;;  %s31_s19 = int_to_ptr.vmem [resolvable:$true] %s30_s19  ;;  %s19_s21 = int_to_ptr.vmem [resolvable:$true] %s18_s21 }
   0x4   :  { %s1017_s22 = scalar_lea.vmem %s31_s19, 6144  ;;  %p1022_p1 = scmp.lt.s32.totalorder %s31_s19, %s31_s19 }
   0x5   :  { %p1018_p0 = scmp.ne.s32.totalorder %s31_s19, %s1017_s22  ;;  %p1023_p2 = scmp.lt.s32.totalorder %s1017_s22, %s1017_s22 }
   0x7   :  { %p1024_p3 = por %p1023_p2, %p1022_p1 }
   0x9   :  { %p1025_p4 = pnand %p1024_p3, %p1018_p0 }
   0xb   :  { %1028 = shalt.err (!%p1025_p4)
}
   0xc   :  { %s1097_s23 = smov 128   ;;  %s1098_s24 = smov 8  }
   0xd   :  { %36 = dma.hbm_to_vmem [thread:$0]  %s1173_s1, 6144, %s31_s19, [#allocation7], %s1097_s23, %s1097_s23, %s1098_s24  }
   0xe   :  { %s1037_s27 = scalar_lea.vmem %s19_s21, 256  ;;  %p1042_p6 = scmp.lt.s32.totalorder %s19_s21, %s19_s21 }
   0xf   :  { %p1038_p5 = scmp.ne.s32.totalorder %s19_s21, %s1037_s27  ;;  %p1043_p7 = scmp.lt.s32.totalorder %s1037_s27, %s1037_s27 }
  0x11   :  { %p1044_p8 = por %p1043_p7, %p1042_p6 }
  0x13   :  { %p1045_p9 = pnand %p1044_p8, %p1038_p5 }
  0x15   :  { %1048 = shalt.err (!%p1045_p9)
}
  0x16   :  { %24 = dma.hbm_to_vmem [thread:$0]  %s1172_s0, 256, %s19_s21, [#allocation4], %s1097_s23, %s1097_s23, %s1098_s24  }
  0x17   :  { %s1099_s30 = smov [#allocation8]  }
  0x18   :  { %s44_s6 = sshll.u32 %s1099_s30, 4  ;;  %s45_s6 = int_to_ptr.vmem [resolvable:$true] %s44_s6 }
  0x19   :  { %s1057_s7 = scalar_lea.vmem %s45_s6, 6144  ;;  %p1062_p11 = scmp.lt.s32.totalorder %s45_s6, %s45_s6 }
  0x1a   :  { %p1058_p10 = scmp.ne.s32.totalorder %s45_s6, %s1057_s7  ;;  %p1063_p12 = scmp.lt.s32.totalorder %s1057_s7, %s1057_s7 }
  0x1c   :  { %p1064_p13 = por %p1063_p12, %p1062_p11 }
  0x1e   :  { %p1065_p0 = pnand %p1064_p13, %p1058_p10 }
  0x20   :  { %1068 = shalt.err (!%p1065_p0)
}
  0x21   :  { %50 = dma.hbm_to_vmem [thread:$0]  %s1175_s3, 6144, %s45_s6, [#allocation7], %s1097_s23, %s1097_s23, %s1098_s24  }
  0x22   :  { %1089 = dma.done.wait [#allocation4], 256  }
  0x23   :  { %1090 = vsyncadd [#allocation4], 4294967040 }
  0x24   :  { %1091 = dma.done.wait [#allocation7], 12288  }
  0x25   :  { %1092 = vsyncadd [#allocation7], 4294955008  ;;  %v1100_v0 = vmov 0.0   ;;  %v92_v1 = vld [vmem:[#allocation6 + $0x78] sm:$0xff]  ;;  %v91_v2 = vld [vmem:[#allocation6 + $0x70] sm:$0xff]  ;;  %s1101_s10 = smov [#allocation9]  }
  0x26   :  { %64 = vst [vmem:[#allocation2] sm:$0x1] %v1100_v0  ;;  %65 = vst [vmem:[#allocation2 + $0x11] sm:$0x1] %v1100_v0  ;;  %v188_v3 = vld [vmem:[#allocation6 + $0xf8] sm:$0xff]  ;;  %792 = vmatprep.subr.mxu0 %v92_v1  ;;  %v187_v4 = vld [vmem:[#allocation6 + $0xf0] sm:$0xff] }
  0x27   :  { %827 = vmatprep.subr.mxu1 %v188_v3  ;;  %793 = vmatpush3.msra.mxu0 %v92_v1  ;;  %v90_v5 = vld [vmem:[#allocation6 + $0x68] sm:$0xff]  ;;  %v89_v7 = vld [vmem:[#allocation6 + $0x60] sm:$0xff]  ;;  %v88_v9 = vld [vmem:[#allocation6 + $0x58] sm:$0xff]  ;;  %s669_s11 = sshll.u32 %s1101_s10, 4  ;;  %s670_s11 = int_to_ptr.vmem [resolvable:$true] %s669_s11 }
  0x28   :  { %828 = vmatpush3.msra.mxu1 %v188_v3  ;;  %v186_v6 = vld [vmem:[#allocation6 + $0xe8] sm:$0xff]  ;;  %794 = vmatprep.subr.mxu0 %v91_v2  ;;  %v185_v8 = vld [vmem:[#allocation6 + $0xe0] sm:$0xff]  ;;  %v184_v10 = vld [vmem:[#allocation6 + $0xd8] sm:$0xff]  ;;  %p1074_p2 = scmp.lt.s32.totalorder %s670_s11, %s670_s11 }
  0x29   :  { %829 = vmatprep.subr.mxu1 %v187_v4  ;;  %795 = vmatpush3.msra.mxu0 %v91_v2  ;;  %v87_v11 = vld [vmem:[#allocation6 + $0x50] sm:$0xff]  ;;  %v86_v13 = vld [vmem:[#allocation6 + $0x48] sm:$0xff]  ;;  %v1152_v16 = vld [vmem:[#allocation3 + $0x8] sm:$0xff] }
  0x2a   :  { %830 = vmatpush3.msra.mxu1 %v187_v4  ;;  %796 = vmatprep.subr.mxu0 %v90_v5  ;;  %v183_v12 = vld [vmem:[#allocation6 + $0xd0] sm:$0xff]  ;;  %v182_v14 = vld [vmem:[#allocation6 + $0xc8] sm:$0xff]  ;;  %67 = vst [vmem:[#allocation2 + $0x9] sm:$0xff] %v1152_v16  ;;  %v85_v17 = vld [vmem:[#allocation6 + $0x40] sm:$0xff] }
  0x2b   :  { %831 = vmatprep.subr.mxu1 %v186_v6  ;;  %797 = vmatpush3.msra.mxu0 %v90_v5  ;;  %v1150_v15 = vld [vmem:[#allocation3] sm:$0xff]  ;;  %v181_v18 = vld [vmem:[#allocation6 + $0xc0] sm:$0xff]  ;;  %v84_v19 = vld [vmem:[#allocation6 + $0x38] sm:$0xff] }
  0x2c   :  { %832 = vmatpush3.msra.mxu1 %v186_v6  ;;  %798 = vmatprep.subr.mxu0 %v89_v7  ;;  %66 = vst [vmem:[#allocation2 + $0x1] sm:$0xff] %v1150_v15  ;;  %v180_v20 = vld [vmem:[#allocation6 + $0xb8] sm:$0xff]  ;;  %v83_v21 = vld [vmem:[#allocation6 + $0x30] sm:$0xff]  ;;  %v82_v23 = vld [vmem:[#allocation6 + $0x28] sm:$0xff] }
  0x2d   :  { %833 = vmatprep.subr.mxu1 %v185_v8  ;;  %799 = vmatpush3.msra.mxu0 %v89_v7  ;;  %v179_v22 = vld [vmem:[#allocation6 + $0xb0] sm:$0xff]  ;;  %v178_v24 = vld [vmem:[#allocation6 + $0xa8] sm:$0xff]  ;;  %v81_v25 = vld [vmem:[#allocation6 + $0x20] sm:$0xff] }
  0x2e   :  { %834 = vmatpush3.msra.mxu1 %v185_v8  ;;  %800 = vmatprep.subr.mxu0 %v88_v9  ;;  %v177_v26 = vld [vmem:[#allocation6 + $0xa0] sm:$0xff]  ;;  %v80_v27 = vld [vmem:[#allocation6 + $0x18] sm:$0xff]  ;;  %v79_v29 = vld [vmem:[#allocation6 + $0x10] sm:$0xff] }
  0x2f   :  { %835 = vmatprep.subr.mxu1 %v184_v10  ;;  %801 = vmatpush3.msra.mxu0 %v88_v9  ;;  %v176_v28 = vld [vmem:[#allocation6 + $0x98] sm:$0xff]  ;;  %v175_v30 = vld [vmem:[#allocation6 + $0x90] sm:$0xff]  ;;  %v78_v31 = vld [vmem:[#allocation6 + $0x8] sm:$0xff] }
  0x30   :  { %836 = vmatpush3.msra.mxu1 %v184_v10  ;;  %802 = vmatprep.subr.mxu0 %v87_v11  ;;  %v174_v32 = vld [vmem:[#allocation6 + $0x88] sm:$0xff]  ;;  %v77_v34 = vld [vmem:[#allocation6] sm:$0xff]  ;;  %v284_v37 = vld [vmem:[#allocation6 + $0x178] sm:$0xff] }
  0x31   :  { %837 = vmatprep.subr.mxu1 %v183_v12  ;;  %803 = vmatpush3.msra.mxu0 %v87_v11  ;;  %v173_v35 = vld [vmem:[#allocation6 + $0x80] sm:$0xff]  ;;  %v283_v38 = vld [vmem:[#allocation6 + $0x170] sm:$0xff]  ;;  %v282_v40 = vld [vmem:[#allocation6 + $0x168] sm:$0xff] }
  0x32   :  { %838 = vmatpush3.msra.mxu1 %v183_v12  ;;  %804 = vmatprep.subr.mxu0 %v86_v13  ;;  %v281_v41 = vld [vmem:[#allocation6 + $0x160] sm:$0xff]  ;;  %v280_v42 = vld [vmem:[#allocation6 + $0x158] sm:$0xff]  ;;  %v279_v43 = vld [vmem:[#allocation6 + $0x150] sm:$0xff] }
  0x33   :  { %839 = vmatprep.subr.mxu1 %v182_v14  ;;  %805 = vmatpush3.msra.mxu0 %v86_v13  ;;  %v75_v33 = vld [vmem:[#allocation2] sm:$0xff]  ;;  %v76_v36 = vld [vmem:[#allocation2 + $0x8] sm:$0xff]  ;;  %v278_v44 = vld [vmem:[#allocation6 + $0x148] sm:$0xff] }
  0x34   :  { %840 = vmatpush3.msra.mxu1 %v182_v14  ;;  %806 = vmatprep.subr.mxu0 %v85_v17  ;;  %v266_v39 = vld [vmem:[#allocation2 + $0x2] sm:$0xff]  ;;  %v275_v47 = vld [vmem:[#allocation6 + $0x130] sm:$0xff]  ;;  %v274_v48 = vld [vmem:[#allocation6 + $0x128] sm:$0xff] }
  0x35   :  { %841 = vmatprep.subr.mxu1 %v181_v18  ;;  %807 = vmatpush3.msra.mxu0 %v85_v17  ;;  %v277_v45 = vld [vmem:[#allocation6 + $0x140] sm:$0xff]  ;;  %v276_v46 = vld [vmem:[#allocation6 + $0x138] sm:$0xff]  ;;  %v271_v51 = vld [vmem:[#allocation6 + $0x110] sm:$0xff] }
  0x36   :  { %842 = vmatpush3.msra.mxu1 %v181_v18  ;;  %808 = vmatprep.subr.mxu0 %v84_v19  ;;  %v273_v49 = vld [vmem:[#allocation6 + $0x120] sm:$0xff]  ;;  %v272_v50 = vld [vmem:[#allocation6 + $0x118] sm:$0xff]  ;;  %v270_v52 = vld [vmem:[#allocation6 + $0x108] sm:$0xff] }
  0x37   :  { %843 = vmatprep.subr.mxu1 %v180_v20  ;;  %809 = vmatpush3.msra.mxu0 %v84_v19  ;;  %v269_v53 = vld [vmem:[#allocation6 + $0x100] sm:$0xff]  ;;  %v390_v55 = vld [vmem:[#allocation8 + $0x78] sm:$0xff]  ;;  %v389_v57 = vld [vmem:[#allocation8 + $0x70] sm:$0xff] }
  0x38   :  { %844 = vmatpush3.msra.mxu1 %v180_v20  ;;  %810 = vmatprep.subr.mxu0 %v83_v21  ;;  %v267_v54 = vld [vmem:[#allocation2 + $0xa] sm:$0xff]  ;;  %v486_v56 = vld [vmem:[#allocation8 + $0xf8] sm:$0xff]  ;;  %v485_v58 = vld [vmem:[#allocation8 + $0xf0] sm:$0xff] }
  0x39   :  { %845 = vmatprep.subr.mxu1 %v179_v22  ;;  %811 = vmatpush3.msra.mxu0 %v83_v21  ;;  %v388_v59 = vld [vmem:[#allocation8 + $0x68] sm:$0xff]  ;;  %v387_v61 = vld [vmem:[#allocation8 + $0x60] sm:$0xff]  ;;  %v386_v63 = vld [vmem:[#allocation8 + $0x58] sm:$0xff] }
  0x3a   :  { %846 = vmatpush3.msra.mxu1 %v179_v22  ;;  %812 = vmatprep.subr.mxu0 %v82_v23  ;;  %v484_v60 = vld [vmem:[#allocation8 + $0xe8] sm:$0xff]  ;;  %v483_v62 = vld [vmem:[#allocation8 + $0xe0] sm:$0xff]  ;;  %v482_v0 = vld [vmem:[#allocation8 + $0xd8] sm:$0xff] }
  0x3b   :  { %847 = vmatprep.subr.mxu1 %v178_v24  ;;  %813 = vmatpush3.msra.mxu0 %v82_v23  ;;  %v385_v1 = vld [vmem:[#allocation8 + $0x50] sm:$0xff]  ;;  %v384_v3 = vld [vmem:[#allocation8 + $0x48] sm:$0xff]  ;;  %v383_v5 = vld [vmem:[#allocation8 + $0x40] sm:$0xff] }
  0x3c   :  { %848 = vmatpush3.msra.mxu1 %v178_v24  ;;  %814 = vmatprep.subr.mxu0 %v81_v25  ;;  %v481_v2 = vld [vmem:[#allocation8 + $0xd0] sm:$0xff]  ;;  %v480_v4 = vld [vmem:[#allocation8 + $0xc8] sm:$0xff]  ;;  %v479_v6 = vld [vmem:[#allocation8 + $0xc0] sm:$0xff] }
  0x3d   :  { %849 = vmatprep.subr.mxu1 %v177_v26  ;;  %815 = vmatpush3.msra.mxu0 %v81_v25  ;;  %v382_v7 = vld [vmem:[#allocation8 + $0x38] sm:$0xff]  ;;  %v477_v9 = vld [vmem:[#allocation8 + $0xb0] sm:$0xff]  ;;  %v476_v10 = vld [vmem:[#allocation8 + $0xa8] sm:$0xff] }
  0x3e   :  { %850 = vmatpush3.msra.mxu1 %v177_v26  ;;  %816 = vmatprep.subr.mxu0 %v80_v27  ;;  %v478_v8 = vld [vmem:[#allocation8 + $0xb8] sm:$0xff]  ;;  %v475_v11 = vld [vmem:[#allocation8 + $0xa0] sm:$0xff]  ;;  %v381_v13 = vld [vmem:[#allocation8 + $0x30] sm:$0xff] }
  0x3f   :  { %851 = vmatprep.subr.mxu1 %v176_v28  ;;  %817 = vmatpush3.msra.mxu0 %v80_v27  ;;  %v474_v12 = vld [vmem:[#allocation8 + $0x98] sm:$0xff]  ;;  %v473_v14 = vld [vmem:[#allocation8 + $0x90] sm:$0xff]  ;;  %v380_v17 = vld [vmem:[#allocation8 + $0x28] sm:$0xff] }
  0x40   :  { %852 = vmatpush3.msra.mxu1 %v176_v28  ;;  %818 = vmatprep.subr.mxu0 %v79_v29  ;;  %v472_v18 = vld [vmem:[#allocation8 + $0x88] sm:$0xff]  ;;  %v379_v19 = vld [vmem:[#allocation8 + $0x20] sm:$0xff]  ;;  %v378_v21 = vld [vmem:[#allocation8 + $0x18] sm:$0xff] }
  0x41   :  { %853 = vmatprep.subr.mxu1 %v175_v30  ;;  %819 = vmatpush3.msra.mxu0 %v79_v29  ;;  %v471_v20 = vld [vmem:[#allocation8 + $0x80] sm:$0xff]  ;;  %v377_v22 = vld [vmem:[#allocation8 + $0x10] sm:$0xff]  ;;  %v376_v23 = vld [vmem:[#allocation8 + $0x8] sm:$0xff] }
  0x42   :  { %854 = vmatpush3.msra.mxu1 %v175_v30  ;;  %820 = vmatprep.subr.mxu0 %v78_v31  ;;  %v375_v24 = vld [vmem:[#allocation8] sm:$0xff]  ;;  %v582_v25 = vld [vmem:[#allocation8 + $0x178] sm:$0xff] }
  0x43   :  { %855 = vmatprep.subr.mxu1 %v174_v32  ;;  %821 = vmatpush3.msra.mxu0 %v78_v31  ;;  %v682_v27 = vld [vmem:[%s1174_s2] ss:$0 sm:$0xff] }
  0x44   :  { %824 = vmatprep.mubr.f32.mxu0 %v75_v33  ;;  %822 = vmatprep.subr.mxu0 %v77_v34 }
  0x45   :  { %856 = vmatpush3.msra.mxu1 %v174_v32  ;;  %823 = vmatpush3.msra.mxu0 %v77_v34 }
  0x46   :  { %857 = vmatprep.subr.mxu1 %v173_v35  ;;  %825 = vmatmul.mubr.f32.vlgmr.msra.gmra.mxu0 %v76_v36 }
  0x47   :  { %862 = vmatprep.subr.mxu0 %v284_v37  ;;  %858 = vmatpush3.msra.mxu1 %v173_v35 }
  0x48   :  { %859 = vmatprep.mubr.f32.mxu1 %v1150_v15  ;;  %863 = vmatpush3.msra.mxu0 %v284_v37 }
  0x49   :  { %860 = vmatmul.mubr.f32.vlgmr.msra.gmra.mxu1 %v1152_v16  ;;  %864 = vmatprep.subr.mxu0 %v283_v38 }
  0x4a   :  { %894 = vmatprep.mubr.f32.mxu0 %v266_v39  ;;  %865 = vmatpush3.msra.mxu0 %v283_v38 }
  0x4b   :  { %866 = vmatprep.subr.mxu0 %v282_v40  ;;  %897 = vmatprep.subr.mxu1 %v390_v55 }
  0x4c   :  { %867 = vmatpush3.msra.mxu0 %v282_v40  ;;  %898 = vmatpush3.msra.mxu1 %v390_v55  ;;  %v570_v55 = vld [vmem:[#allocation8 + $0x118] sm:$0xff] }
  0x4d   :  { %868 = vmatprep.subr.mxu0 %v281_v41  ;;  %899 = vmatprep.subr.mxu1 %v389_v57 }
  0x4e   :  { %869 = vmatpush3.msra.mxu0 %v281_v41  ;;  %900 = vmatpush3.msra.mxu1 %v389_v57  ;;  %v568_v57 = vld [vmem:[#allocation8 + $0x108] sm:$0xff] }
  0x4f   :  { %870 = vmatprep.subr.mxu0 %v280_v42  ;;  %901 = vmatprep.subr.mxu1 %v388_v59 }
  0x50   :  { %871 = vmatpush3.msra.mxu0 %v280_v42  ;;  %902 = vmatpush3.msra.mxu1 %v388_v59 }
  0x51   :  { %872 = vmatprep.subr.mxu0 %v279_v43  ;;  %903 = vmatprep.subr.mxu1 %v387_v61 }
  0x52   :  { %873 = vmatpush3.msra.mxu0 %v279_v43  ;;  %904 = vmatpush3.msra.mxu1 %v387_v61  ;;  %v581_v43 = vld [vmem:[#allocation8 + $0x170] sm:$0xff]  ;;  %v683_v61 = vld [vmem:[%s1176_s4] ss:$0 sm:$0xff]  ;;  %s1069_s4 = scalar_lea.vmem %s670_s11, 256 }
  0x53   :  { %874 = vmatprep.subr.mxu0 %v278_v44  ;;  %905 = vmatprep.subr.mxu1 %v386_v63  ;;  %p1070_p1 = scmp.ne.s32.totalorder %s670_s11, %s1069_s4  ;;  %p1075_p3 = scmp.lt.s32.totalorder %s1069_s4, %s1069_s4 }
  0x54   :  { %875 = vmatpush3.msra.mxu0 %v278_v44  ;;  %906 = vmatpush3.msra.mxu1 %v386_v63 }
  0x55   :  { %876 = vmatprep.subr.mxu0 %v277_v45  ;;  %907 = vmatprep.subr.mxu1 %v385_v1  ;;  %p1076_p4 = por %p1075_p3, %p1074_p2 }
  0x56   :  { %877 = vmatpush3.msra.mxu0 %v277_v45  ;;  %908 = vmatpush3.msra.mxu1 %v385_v1  ;;  %v580_v45 = vld [vmem:[#allocation8 + $0x168] sm:$0xff] }
  0x57   :  { %878 = vmatprep.subr.mxu0 %v276_v46  ;;  %909 = vmatprep.subr.mxu1 %v384_v3  ;;  %p1077_p5 = pnand %p1076_p4, %p1070_p1 }
  0x58   :  { %879 = vmatpush3.msra.mxu0 %v276_v46  ;;  %910 = vmatpush3.msra.mxu1 %v384_v3  ;;  %v579_v46 = vld [vmem:[#allocation8 + $0x160] sm:$0xff] }
  0x59   :  { %880 = vmatprep.subr.mxu0 %v275_v47  ;;  %911 = vmatprep.subr.mxu1 %v383_v5 }
  0x5a   :  { %881 = vmatpush3.msra.mxu0 %v275_v47  ;;  %912 = vmatpush3.msra.mxu1 %v383_v5  ;;  %v578_v47 = vld [vmem:[#allocation8 + $0x158] sm:$0xff] }
  0x5b   :  { %882 = vmatprep.subr.mxu0 %v274_v48  ;;  %913 = vmatprep.subr.mxu1 %v382_v7 }
  0x5c   :  { %883 = vmatpush3.msra.mxu0 %v274_v48  ;;  %914 = vmatpush3.msra.mxu1 %v382_v7  ;;  %v577_v48 = vld [vmem:[#allocation8 + $0x150] sm:$0xff] }
  0x5d   :  { %884 = vmatprep.subr.mxu0 %v273_v49  ;;  %915 = vmatprep.subr.mxu1 %v381_v13 }
  0x5e   :  { %885 = vmatpush3.msra.mxu0 %v273_v49  ;;  %916 = vmatpush3.msra.mxu1 %v381_v13  ;;  %v576_v49 = vld [vmem:[#allocation8 + $0x148] sm:$0xff] }
  0x5f   :  { %886 = vmatprep.subr.mxu0 %v272_v50  ;;  %917 = vmatprep.subr.mxu1 %v380_v17 }
  0x60   :  { %887 = vmatpush3.msra.mxu0 %v272_v50  ;;  %918 = vmatpush3.msra.mxu1 %v380_v17  ;;  %v575_v50 = vld [vmem:[#allocation8 + $0x140] sm:$0xff] }
  0x61   :  { %888 = vmatprep.subr.mxu0 %v271_v51  ;;  %919 = vmatprep.subr.mxu1 %v379_v19 }
  0x62   :  { %889 = vmatpush3.msra.mxu0 %v271_v51  ;;  %920 = vmatpush3.msra.mxu1 %v379_v19  ;;  %v574_v51 = vld [vmem:[#allocation8 + $0x138] sm:$0xff] }
  0x63   :  { %890 = vmatprep.subr.mxu0 %v270_v52  ;;  %921 = vmatprep.subr.mxu1 %v378_v21 }
  0x64   :  { %891 = vmatpush3.msra.mxu0 %v270_v52  ;;  %922 = vmatpush3.msra.mxu1 %v378_v21  ;;  %v573_v52 = vld [vmem:[#allocation8 + $0x130] sm:$0xff] }
  0x65   :  { %892 = vmatprep.subr.mxu0 %v269_v53  ;;  %923 = vmatprep.subr.mxu1 %v377_v22 }
  0x66   :  { %893 = vmatpush3.msra.mxu0 %v269_v53  ;;  %924 = vmatpush3.msra.mxu1 %v377_v22  ;;  %v572_v53 = vld [vmem:[#allocation8 + $0x128] sm:$0xff] }
  0x67   :  { %895 = vmatmul.mubr.f32.vlgmr.msra.gmra.mxu0 %v267_v54  ;;  %932 = vmatprep.subr.mxu0 %v486_v56  ;;  %v571_v54 = vld [vmem:[#allocation8 + $0x120] sm:$0xff] }
  0x68   :  { %933 = vmatpush3.msra.mxu0 %v486_v56  ;;  %925 = vmatprep.subr.mxu1 %v376_v23  ;;  %v569_v56 = vld [vmem:[#allocation8 + $0x110] sm:$0xff] }
  0x69   :  { %934 = vmatprep.subr.mxu0 %v485_v58  ;;  %926 = vmatpush3.msra.mxu1 %v376_v23 }
  0x6a   :  { %935 = vmatpush3.msra.mxu0 %v485_v58  ;;  %927 = vmatprep.subr.mxu1 %v375_v24  ;;  %v567_v58 = vld [vmem:[#allocation8 + $0x100] sm:$0xff] }
  0x6b   :  { %936 = vmatprep.subr.mxu0 %v484_v60  ;;  %928 = vmatpush3.msra.mxu1 %v375_v24 }
  0x6c   :  { %937 = vmatpush3.msra.mxu0 %v484_v60  ;;  %967 = vmatprep.subr.mxu1 %v582_v25 }
  0x6d   :  { %938 = vmatprep.subr.mxu0 %v483_v62 }
  0x6e   :  { %939 = vmatpush3.msra.mxu0 %v483_v62 }
  0x6f   :  { %940 = vmatprep.subr.mxu0 %v482_v0 }
  0x70   :  { %941 = vmatpush3.msra.mxu0 %v482_v0 }
  0x71   :  { %942 = vmatprep.subr.mxu0 %v481_v2 }
  0x72   :  { %943 = vmatpush3.msra.mxu0 %v481_v2 }
  0x73   :  { %944 = vmatprep.subr.mxu0 %v480_v4 }
  0x74   :  { %945 = vmatpush3.msra.mxu0 %v480_v4 }
  0x75   :  { %946 = vmatprep.subr.mxu0 %v479_v6 }
  0x76   :  { %947 = vmatpush3.msra.mxu0 %v479_v6 }
  0x77   :  { %948 = vmatprep.subr.mxu0 %v478_v8 }
  0x78   :  { %949 = vmatpush3.msra.mxu0 %v478_v8 }
  0x79   :  { %950 = vmatprep.subr.mxu0 %v477_v9 }
  0x7a   :  { %951 = vmatpush3.msra.mxu0 %v477_v9 }
  0x7b   :  { %952 = vmatprep.subr.mxu0 %v476_v10 }
  0x7c   :  { %953 = vmatpush3.msra.mxu0 %v476_v10 }
  0x7d   :  { %954 = vmatprep.subr.mxu0 %v475_v11 }
  0x7e   :  { %955 = vmatpush3.msra.mxu0 %v475_v11 }
  0x7f   :  { %956 = vmatprep.subr.mxu0 %v474_v12 }
  0x80   :  { %957 = vmatpush3.msra.mxu0 %v474_v12 }
  0x81   :  { %958 = vmatprep.subr.mxu0 %v473_v14 }
  0x82   :  { %959 = vmatpush3.msra.mxu0 %v473_v14 }
  0x83   :  { %960 = vmatprep.subr.mxu0 %v472_v18 }
  0x84   :  { %961 = vmatpush3.msra.mxu0 %v472_v18 }
  0x85   :  { %962 = vmatprep.subr.mxu0 %v471_v20 }
  0x86   :  { %963 = vmatpush3.msra.mxu0 %v471_v20 }
 0x106   :  { %v826_v26 = vpop.f32.mrf.mxu0 }
 0x107   :  { %v169_v30 = vadd.f32 %v826_v26, %v682_v27 }
 0x108   :  { %v159_v28 = vpop.f32.mrf.mxu0 }
 0x109   :  { %v861_v29 = vpop.f32.mrf.mxu1  ;;  %v168_v31 = vadd.f32 %v682_v27, %v159_v28 }
 0x10a   :  { %v265_v33 = vadd.f32 %v861_v29, %v169_v30 }
 0x10b   :  { %v255_v32 = vpop.f32.mrf.mxu1 }
 0x10c   :  { %v264_v35 = vadd.f32 %v255_v32, %v168_v31 }
 0x127   :  { %v896_v34 = vpop.f32.mrf.mxu0 }
 0x128   :  { %v361_v36 = vadd.f32 %v896_v34, %v265_v33 }
 0x129   :  { %v351_v37 = vpop.f32.mrf.mxu0 }
 0x12a   :  { %v363_v38 = vmax.f32 %v361_v36, 0.0  ;;  %v360_v39 = vadd.f32 %v351_v37, %v264_v35 }
 0x12c   :  { %365 = vst [vmem:[#allocation2 + $0x9] sm:$0xff] %v363_v38  ;;  %v362_v40 = vmax.f32 %v360_v39, 0.0 }
 0x12e   :  { %364 = vst [vmem:[#allocation2 + $0x1] sm:$0xff] %v362_v40  ;;  %964 = vmatprep.mubr.f32.mxu0 %v362_v40 }
 0x12f   :  { %965 = vmatmul.mubr.f32.vlgmr.msra.gmra.mxu0 %v363_v38 }
 0x133   :  { %v565_v59 = vld [vmem:[#allocation2 + $0xa] sm:$0xff] }
 0x135   :  { %v373_v41 = vld [vmem:[#allocation2] sm:$0xff]  ;;  %v374_v42 = vld [vmem:[#allocation2 + $0x8] sm:$0xff] }
 0x136   :  { %929 = vmatprep.mubr.f32.mxu1 %v373_v41  ;;  %v564_v44 = vld [vmem:[#allocation2 + $0x2] sm:$0xff] }
 0x137   :  { %930 = vmatmul.mubr.f32.vlgmr.msra.gmra.mxu1 %v374_v42 }
 0x138   :  { %968 = vmatpush3.msra.mxu1 %v582_v25  ;;  %999 = vmatprep.mubr.f32.mxu1 %v564_v44 }
 0x139   :  { %969 = vmatprep.subr.mxu1 %v581_v43 }
 0x13a   :  { %970 = vmatpush3.msra.mxu1 %v581_v43 }
 0x13b   :  { %971 = vmatprep.subr.mxu1 %v580_v45 }
 0x13c   :  { %972 = vmatpush3.msra.mxu1 %v580_v45 }
 0x13d   :  { %973 = vmatprep.subr.mxu1 %v579_v46 }
 0x13e   :  { %974 = vmatpush3.msra.mxu1 %v579_v46 }
 0x13f   :  { %975 = vmatprep.subr.mxu1 %v578_v47 }
 0x140   :  { %976 = vmatpush3.msra.mxu1 %v578_v47 }
 0x141   :  { %977 = vmatprep.subr.mxu1 %v577_v48 }
 0x142   :  { %978 = vmatpush3.msra.mxu1 %v577_v48 }
 0x143   :  { %979 = vmatprep.subr.mxu1 %v576_v49 }
 0x144   :  { %980 = vmatpush3.msra.mxu1 %v576_v49 }
 0x145   :  { %981 = vmatprep.subr.mxu1 %v575_v50 }
 0x146   :  { %982 = vmatpush3.msra.mxu1 %v575_v50 }
 0x147   :  { %983 = vmatprep.subr.mxu1 %v574_v51 }
 0x148   :  { %984 = vmatpush3.msra.mxu1 %v574_v51 }
 0x149   :  { %985 = vmatprep.subr.mxu1 %v573_v52 }
 0x14a   :  { %986 = vmatpush3.msra.mxu1 %v573_v52 }
 0x14b   :  { %987 = vmatprep.subr.mxu1 %v572_v53 }
 0x14c   :  { %988 = vmatpush3.msra.mxu1 %v572_v53 }
 0x14d   :  { %989 = vmatprep.subr.mxu1 %v571_v54 }
 0x14e   :  { %990 = vmatpush3.msra.mxu1 %v571_v54 }
 0x14f   :  { %991 = vmatprep.subr.mxu1 %v570_v55 }
 0x150   :  { %992 = vmatpush3.msra.mxu1 %v570_v55 }
 0x151   :  { %993 = vmatprep.subr.mxu1 %v569_v56 }
 0x152   :  { %994 = vmatpush3.msra.mxu1 %v569_v56 }
 0x153   :  { %995 = vmatprep.subr.mxu1 %v568_v57 }
 0x154   :  { %996 = vmatpush3.msra.mxu1 %v568_v57 }
 0x155   :  { %997 = vmatprep.subr.mxu1 %v567_v58 }
 0x156   :  { %998 = vmatpush3.msra.mxu1 %v567_v58 }
 0x157   :  { %1000 = vmatmul.mubr.f32.vlgmr.msra.gmra.mxu1 %v565_v59 }
 0x1ef   :  { %v966_v0 = vpop.f32.mrf.mxu0 }
 0x1f1   :  { %v553_v3 = vpop.f32.mrf.mxu0 }
 0x1f7   :  { %v931_v60 = vpop.f32.mrf.mxu1 }
 0x1f8   :  { %v467_v63 = vadd.f32 %v931_v60, %v683_v61 }
 0x1f9   :  { %v457_v62 = vpop.f32.mrf.mxu1 }
 0x1fa   :  { %v466_v1 = vadd.f32 %v683_v61, %v457_v62  ;;  %v563_v2 = vadd.f32 %v966_v0, %v467_v63 }
 0x1fc   :  { %v562_v5 = vadd.f32 %v553_v3, %v466_v1 }
 0x217   :  { %v1001_v4 = vpop.f32.mrf.mxu1 }
 0x218   :  { %v659_v6 = vadd.f32 %v1001_v4, %v563_v2 }
 0x219   :  { %v649_v7 = vpop.f32.mrf.mxu1 }
 0x21a   :  { %v661_v8 = vadd.f32 %v659_v6, %v1152_v16  ;;  %v658_v9 = vadd.f32 %v649_v7, %v562_v5 }
 0x21c   :  { %663 = vst [vmem:[#allocation9 + $0x8] sm:$0xff] %v661_v8  ;;  %v660_v10 = vadd.f32 %v658_v9, %v1150_v15 }
 0x21e   :  { %662 = vst [vmem:[#allocation9] sm:$0xff] %v660_v10 }
 0x21f   :  { %1080 = shalt.err (!%p1077_p5)
}
 0x220   :  { %675 = dma.vmem_to_hbm [thread:$0]  %s670_s11, 256, %s1177_s5, [#allocation5], %s1097_s23, %s1097_s23, %s1098_s24  }
 0x221   :  { %1093 = dma.done.wait [#allocation5], 256  }
 0x222   :  { %1094 = vsyncadd [#allocation5], 4294967040 }
 0x223   :  { %679 = vsyncpa [#allocation4], 1 }
 0x224   :  { %680 = vsyncpa [#allocation7], 1 }
 0x225   :  { %681 = vsyncpa [#allocation5], 1 }

</bundles_post_ra>
